<compile_context>
chip_gen: v7x
topology: tpu7x:2x2x1
jax: 0.10.0
libtpu: 0.0.40
codegen_flags: <defaults>
</compile_context>

<pallas_src>
import math

import jax
import jax.numpy as jnp
from jax.experimental import pallas as pl
from jax.experimental.pallas import tpu as pltpu


# ------------------------------- Pallas kernel -------------------------------

def mixer_block_kernel(x_ref, w1_ref, b1_ref, w2_ref, b2_ref, o_ref):
    """One (batch-chunk, D-tile) step: out = trilW2 @ ReLU(trilW1 @ x + b1) + b2."""
    w1 = w1_ref[...]                        # (L, L), grid-resident
    w2 = w2_ref[...]                        # (L, L), grid-resident
    b1 = b1_ref[...]                        # (L, 1), f32
    b2 = b2_ref[...]                        # (L, 1), f32
    bt = x_ref.shape[0]                     # static batch-chunk size (small -> unrolled)
    for i in range(bt):
        x = x_ref[i]                                                    # (L, Dt)
        h = jnp.dot(w1, x, preferred_element_type=jnp.float32)          # MXU
        h = jnp.maximum(h + b1, 0.0).astype(w2.dtype)                   # bias + ReLU
        y = jnp.dot(w2, h, preferred_element_type=jnp.float32)          # MXU
        o_ref[i] = (y + b2).astype(o_ref.dtype)


# ------------------------------- tiling helpers ------------------------------

_LANE = 128
_MAX_BATCH_BLOCK = 16       # cap batches per grid step (in-kernel loop is unrolled)


def _round_up(n, m):
    return ((n + m - 1) // m) * m


def _largest_divisor_leq(n, cap, multiple_of=1):
    best = None
    d = multiple_of
    cap = min(n, cap)
    while d <= cap:
        if n % d == 0:
            best = d
        d += multiple_of
    return best


def _choose_tiling(B, L, Dp, itemsize, act_target_bytes):
    """Pick (batch_tile, d_tile): ~act_target_bytes activation blocks, lane aligned."""
    max_dt = max(_LANE, act_target_bytes // max(1, L * itemsize))
    d_tile = _largest_divisor_leq(Dp, max_dt, multiple_of=_LANE) or _LANE
    per_batch = L * d_tile * itemsize
    bt = 1
    if d_tile == Dp and B > 1 and per_batch < act_target_bytes:
        bt = _largest_divisor_leq(
            B, min(_MAX_BATCH_BLOCK, max(1, act_target_bytes // per_batch))) or 1
    # Keep at least 2 grid steps along a parallel axis so both v7x TensorCores get work.
    if (B // bt) * (Dp // d_tile) < 2 and B > 1:
        bt = _largest_divisor_leq(B, max(1, B // 2)) or 1
    return bt, d_tile


def _constant_spec(shape):
    """BlockSpec for a grid-invariant operand; single-buffered when supported."""
    idx = lambda b, j: (0,) * len(shape)
    try:
        return pl.BlockSpec(shape, idx, pipeline_mode=pl.Buffered(1))
    except Exception:            # older jax without pipeline_mode: default buffering
        return pl.BlockSpec(shape, idx)


# --------------------------------- wrapper -----------------------------------

def mlp_mixer_block(x, w1, b1, w2, b2, *, max_len, act_target_bytes=2 << 20,
                    weight_dtype=None):
    """Forward pass of MLP_Mixer_Block. x: (B, L, D); w*: (max_len, max_len); b*: (max_len,)."""
    B, L, D = x.shape
    assert L <= max_len
    # The torch forward only type-checks when x_len == max_len (see header comment).
    assert L == max_len, "MLP_Mixer_Block forward requires x_len == max_len"

    # On v6e/v7x, passing weight_dtype=jnp.bfloat16 roughly doubles MXU throughput for
    # large L while keeping f32 accumulation; default keeps the input dtype for exactness.
    wdt = x.dtype if weight_dtype is None else weight_dtype

    # Pre-apply the static tril masks once, outside the kernel; biases as (L, 1) f32 so
    # they broadcast over the lane (d_model) axis inside the kernel.
    w1m = jnp.tril(w1[:L, :L]).astype(wdt)
    w2m = jnp.tril(w2[:L, :L]).astype(wdt)
    b1c = b1[:L].reshape(L, 1).astype(jnp.float32)
    b2c = b2[:L].reshape(L, 1).astype(jnp.float32)

    itemsize = jnp.dtype(x.dtype).itemsize
    w_itemsize = jnp.dtype(wdt).itemsize

    # Pad d_model up to a lane multiple so output stores stay dense; slice back below.
    Dp = _round_up(D, _LANE)
    x_in = x if Dp == D else jnp.pad(x, ((0, 0), (0, 0), (0, Dp - D)))

    # VMEM budget (sized for v7x's 64 MiB/TC): resident weights + biases first, then
    # hand the remainder to the double-buffered activation in/out blocks.
    Lp = _round_up(L, 8)
    weight_bytes = 2 * Lp * _round_up(L, _LANE) * w_itemsize      # single-buffered
    bias_bytes = 2 * Lp * _LANE * 4
    budget = 40 << 20
    # TODO(synk): for very large max_len (f32 L >~ 2400) the resident (L,L) weights alone
    # exceed the v7x budget; that regime needs an L-tiled reduction grid axis instead.
    avail = max(budget - weight_bytes - bias_bytes, 1 << 20)
    act_target = max(64 << 10, min(act_target_bytes, avail // 4))

    bt, d_tile = _choose_tiling(B, L, Dp, itemsize, act_target)
    grid = (B // bt, Dp // d_tile)

    act_block_bytes = bt * Lp * d_tile * itemsize
    footprint = weight_bytes + bias_bytes + 4 * act_block_bytes   # in+out, double-buffered
    vmem_limit = int(min(max(footprint * 1.3, 32 << 20), 64 << 20))

    out = pl.pallas_call(
        mixer_block_kernel,
        out_shape=jax.ShapeDtypeStruct((B, L, Dp), x.dtype),
        grid=grid,
        in_specs=[
            pl.BlockSpec((bt, L, d_tile), lambda b, j: (b, 0, j)),  # activation tile
            _constant_spec((L, L)),                                 # tril(W1), resident
            _constant_spec((L, 1)),                                 # b1
            _constant_spec((L, L)),                                 # tril(W2), resident
            _constant_spec((L, 1)),                                 # b2
        ],
        out_specs=pl.BlockSpec((bt, L, d_tile), lambda b, j: (b, 0, j)),
        compiler_params=pltpu.CompilerParams(
            dimension_semantics=("parallel", "parallel"),
            vmem_limit_bytes=vmem_limit),
    )(x_in, w1m, b1c, w2m, b2c)

    return out if Dp == D else out[:, :, :D]


# ----------------------------- pure-JAX reference ----------------------------

def reference_forward(x, w1, b1, w2, b2):
    xt = jnp.swapaxes(x, 1, 2)                                  # b l d -> b d l
    h = jnp.maximum(xt @ jnp.tril(w1).T + b1, 0.0)
    y = h @ jnp.tril(w2).T + b2
    return jnp.swapaxes(y, 1, 2)                                # b d l -> b l d


# ----------------------------------- main ------------------------------------

if __name__ == "__main__":
    key = jax.random.PRNGKey(0)
    configs = [
        (2, 8, 256),     # B, L(=max_len), D  -> whole-D lane tile, grid (2, 1)
        (2, 16, 1024),   # larger D tile, grid (2, 1)
        (4, 8, 128),     # batch blocking: Bt = 2, grid (2, 1)
        (3, 8, 200),     # unaligned D -> padded to 256, output sliced back
    ]
    for (B, L, D) in configs:
        key, kx, k1, k2, k3, k4 = jax.random.split(key, 6)
        bound = 1.0 / math.sqrt(L)                               # nn.Linear default init
        x = jax.random.normal(kx, (B, L, D), jnp.float32)
        w1 = jax.random.uniform(k1, (L, L), jnp.float32, -bound, bound)
        b1 = jax.random.uniform(k2, (L,), jnp.float32, -bound, bound)
        w2 = jax.random.uniform(k3, (L, L), jnp.float32, -bound, bound)
        b2 = jax.random.uniform(k4, (L,), jnp.float32, -bound, bound)

        out = jax.block_until_ready(mlp_mixer_block(x, w1, b1, w2, b2, max_len=L))

        ref = reference_forward(x, w1, b1, w2, b2)
        assert out.shape == (B, L, D), out.shape
        err = float(jnp.max(jnp.abs(out - ref)))
        assert jnp.allclose(out, ref, atol=1e-4, rtol=1e-4), err

    print("KERNEL_OK")
</pallas_src>

<mosaic_0001>
module attributes {stable_mosaic.version = 11 : i64} {
  func.func @mixer_block_kernel(%arg0: i32, %arg1: i32, %arg2: memref<1x8x256xf32, #tpu.memory_space<vmem>>, %arg3: memref<8x8xf32, #tpu.memory_space<vmem>>, %arg4: memref<8x1xf32, #tpu.memory_space<vmem>>, %arg5: memref<8x8xf32, #tpu.memory_space<vmem>>, %arg6: memref<8x1xf32, #tpu.memory_space<vmem>>, %arg7: memref<1x8x256xf32, #tpu.memory_space<vmem>>) attributes {dimension_semantics = [#tpu.dimension_semantics<parallel>, #tpu.dimension_semantics<parallel>], iteration_bounds = array<i64: 2, 1>, scalar_prefetch = 0 : i64, scratch_operands = 0 : i64, tpu.core_type = #tpu.core_type<tc>, window_params = [{transform_indices = @transform_0, window_bounds = array<i64: 1, 8, 256>}, {pipeline_mode = #tpu.pipeline_mode<synchronous>, transform_indices = @transform_1, window_bounds = array<i64: 8, 8>}, {pipeline_mode = #tpu.pipeline_mode<synchronous>, transform_indices = @transform_2, window_bounds = array<i64: 8, 1>}, {pipeline_mode = #tpu.pipeline_mode<synchronous>, transform_indices = @transform_3, window_bounds = array<i64: 8, 8>}, {pipeline_mode = #tpu.pipeline_mode<synchronous>, transform_indices = @transform_4, window_bounds = array<i64: 8, 1>}, {transform_indices = @transform_5, window_bounds = array<i64: 1, 8, 256>}]} {
    %c0 = arith.constant 0 : index
    %c0_0 = arith.constant 0 : index
    %0 = vector.load %arg3[%c0, %c0_0] : memref<8x8xf32, #tpu.memory_space<vmem>>, vector<8x8xf32>
    %c0_1 = arith.constant 0 : index
    %c0_2 = arith.constant 0 : index
    %1 = vector.load %arg5[%c0_1, %c0_2] : memref<8x8xf32, #tpu.memory_space<vmem>>, vector<8x8xf32>
    %c0_3 = arith.constant 0 : index
    %c0_4 = arith.constant 0 : index
    %2 = vector.load %arg4[%c0_3, %c0_4] : memref<8x1xf32, #tpu.memory_space<vmem>>, vector<8x1xf32>
    %c0_5 = arith.constant 0 : index
    %c0_6 = arith.constant 0 : index
    %3 = vector.load %arg6[%c0_5, %c0_6] : memref<8x1xf32, #tpu.memory_space<vmem>>, vector<8x1xf32>
    %c0_7 = arith.constant 0 : index
    %c0_8 = arith.constant 0 : index
    %c0_9 = arith.constant 0 : index
    %4 = vector.load %arg2[%c0_7, %c0_8, %c0_9] : memref<1x8x256xf32, #tpu.memory_space<vmem>>, vector<1x8x256xf32>
    %5 = vector.shape_cast %4 : vector<1x8x256xf32> to vector<8x256xf32>
    %cst = arith.constant dense<0.000000e+00> : vector<8x256xf32>
    %6 = tpu.matmul %0, %5, %cst {dimension_numbers = #tpu.dot_dimension_numbers<[1], [0], [0], [1], [0, 0, 1, 1], [], []>} : vector<8x8xf32>, vector<8x256xf32>, vector<8x256xf32> -> vector<8x256xf32>
    %7 = vector.broadcast %2 : vector<8x1xf32> to vector<8x256xf32>
    %8 = arith.addf %6, %7 : vector<8x256xf32>
    %cst_10 = arith.constant 0.000000e+00 : f32
    %9 = vector.broadcast %cst_10 : f32 to vector<8x256xf32>
    %10 = arith.maximumf %8, %9 : vector<8x256xf32>
    %cst_11 = arith.constant dense<0.000000e+00> : vector<8x256xf32>
    %11 = tpu.matmul %1, %10, %cst_11 {dimension_numbers = #tpu.dot_dimension_numbers<[1], [0], [0], [1], [0, 0, 1, 1], [], []>} : vector<8x8xf32>, vector<8x256xf32>, vector<8x256xf32> -> vector<8x256xf32>
    %12 = vector.broadcast %3 : vector<8x1xf32> to vector<8x256xf32>
    %13 = arith.addf %11, %12 : vector<8x256xf32>
    %c0_12 = arith.constant 0 : index
    %c0_13 = arith.constant 0 : index
    %c0_14 = arith.constant 0 : index
    %14 = vector.load %arg7[%c0_12, %c0_13, %c0_14] : memref<1x8x256xf32, #tpu.memory_space<vmem>>, vector<1x8x256xf32>
    %15 = vector.shape_cast %14 : vector<1x8x256xf32> to vector<8x256xf32>
    %16 = vector.shape_cast %13 : vector<8x256xf32> to vector<1x8x256xf32>
    tpu.vector_store %arg7[%c0_12, %c0_13, %c0_14], %16 {strides = array<i32>} : memref<1x8x256xf32, #tpu.memory_space<vmem>>, vector<1x8x256xf32>,
    return
  }
  func.func @transform_0(%arg0: i32, %arg1: i32) -> (i32, i32, i32) {
    %c0_i32 = arith.constant 0 : i32
    %c0_i32_0 = arith.constant 0 : i32
    return %arg0, %c0_i32, %arg1 : i32, i32, i32
  }
  func.func @transform_1(%arg0: i32, %arg1: i32) -> (i32, i32) {
    %c0_i32 = arith.constant 0 : i32
    %c0_i32_0 = arith.constant 0 : i32
    %c0_i32_1 = arith.constant 0 : i32
    return %c0_i32, %c0_i32_0 : i32, i32
  }
  func.func @transform_2(%arg0: i32, %arg1: i32) -> (i32, i32) {
    %c0_i32 = arith.constant 0 : i32
    %c0_i32_0 = arith.constant 0 : i32
    %c0_i32_1 = arith.constant 0 : i32
    return %c0_i32, %c0_i32_0 : i32, i32
  }
  func.func @transform_3(%arg0: i32, %arg1: i32) -> (i32, i32) {
    %c0_i32 = arith.constant 0 : i32
    %c0_i32_0 = arith.constant 0 : i32
    %c0_i32_1 = arith.constant 0 : i32
    return %c0_i32, %c0_i32_0 : i32, i32
  }
  func.func @transform_4(%arg0: i32, %arg1: i32) -> (i32, i32) {
    %c0_i32 = arith.constant 0 : i32
    %c0_i32_0 = arith.constant 0 : i32
    %c0_i32_1 = arith.constant 0 : i32
    return %c0_i32, %c0_i32_0 : i32, i32
  }
  func.func @transform_5(%arg0: i32, %arg1: i32) -> (i32, i32, i32) {
    %c0_i32 = arith.constant 0 : i32
    %c0_i32_0 = arith.constant 0 : i32
    return %arg0, %c0_i32, %arg1 : i32, i32, i32
  }
}

</mosaic_0001>

<bundles_post_ra>
// kernel: tpu_custom_call.1
= control target key start
LH: loop header
LB: loop body
LE: loop exit
PB: predicated region body
PF: predicated region fallthrough
CT: control target
= control target key end

     0   :  { %10 = vsyncpa [#allocation3], 0  ;;  %s953_s0 = inlined_call_operand.hbm [shape: f32[2,8,256], index: 0, kind: input, shape index: {}]   ;;  %s954_s1 = inlined_call_operand.vmem [shape: f32[8,8], index: 1, kind: input, shape index: {}]   ;;  %s955_s2 = inlined_call_operand.vmem [shape: f32[8,1], index: 2, kind: input, shape index: {}]   ;;  %s956_s3 = inlined_call_operand.vmem [shape: f32[8,8], index: 3, kind: input, shape index: {}]   ;;  %s957_s4 = inlined_call_operand.vmem [shape: f32[8,1], index: 4, kind: input, shape index: {}]   ;;  %s958_s5 = inlined_call_operand.hbm [shape: f32[2,8,256], index: 5, kind: output, shape index: {}]  }
   0x1   :  { %12 = vsyncpa [#allocation3 + $0x1], 0 }
   0x2   :  { %13 = vsyncpa [#allocation4], 0 }
   0x3   :  { %15 = vsyncpa [#allocation4 + $0x1], 0  ;;  %s763_s18 = smov 0   ;;  %s765_s19 = smov 0  }
   0x4   :  { %s767_s20 = smov 0   ;;  %s769_s21 = smov 0  }
   0x5   :  { %s771_s22 = smov 0   ;;  %s773_s23 = smov 0  }
   0x6 LB: > { %s531_s24 = sadd.s32 4294967295, %s727_s23   ;;  %s532_s25 = sadd.s32 4294967294, %s727_s23   ;;  %s727_s23 = sphi %s773_s23, %s21_s23   ;;  %s723_s22 = sphi %s771_s22, %s974_s22   ;;  %s719_s21 = sphi %s769_s21, %s973_s21   ;;  %s715_s20 = sphi %s767_s20, %s972_s20   ;;  %s711_s19 = sphi %s765_s19, %s971_s19   ;;  %s707_s18 = sphi %s763_s18, %s970_s18  }
   0x7   : > { %s33_s26 = sadd.s32 1, %s723_s22  ;;  %s42_s27 = sadd.s32 1, %s715_s20 }
   0x8   : > { %p35_p0 = scmp.ge.s32.totalorder %s33_s26, 2  ;;  %p49_p1 = scmp.ne.s32.totalorder %s715_s20, %s711_s19 }
   0x9   : > { %p50_p2 = scmp.eq.s32.totalorder %s727_s23, 0  ;;  %p55_p3 = scmp.ne.s32.totalorder %s711_s19, %s707_s18 }
   0xa   : > { %s976_s26 = smov (%p35_p0, %s33_s26), 0  ;;  %p56_p5 = scmp.eq.s32.totalorder %s531_s24, 0 }
   0xb   : > { %p804_p4 = por %p50_p2, %p49_p1  ;;  %s37_s29 = ssub.s32 %s723_s22, %s976_s26 }
   0xc   : > { %p165_p6 = scmp.eq.s32.totalorder %s531_s24, 1  ;;  %p40_p7 = scmp.eq.s32.totalorder %s37_s29, 0 }
   0xd   : > { %p810_p8 = por %p56_p5, %p55_p3  ;;  %p171_p10 = scmp.eq.s32.totalorder %s532_s25, 1 }
   0xe   : > { %p814_p9 = por %p165_p6, %p49_p1  ;;  %p562_p13 = scmp.lt.s32.totalorder %s727_s23, 2 }
   0xf   : > { %s819_s7 = scalar_select %p40_p7, %s715_s20, %s42_s27  }
  0x10   : > { %s962_s6 = scalar_select %p814_p9, 1, 0 }
  0x11   : > { %p821_p11 = por %p171_p10, %p55_p3  ;;  %s203_s9 = sand.u32 1, %s715_s20  }
  0x12   : > { %s535_s10 = sshll.u32 %s203_s9, 4  ;;  %s548_s11 = sshll.u32 %s723_s22, 8 }
  0x13   : > { %s963_s8 = scalar_select %p821_p11, 1, 0 }
  0x14   : > { %s832_s14 = scalar_lea.hbm %s953_s0, %s548_s11  ;;  %s207_s15 = scalar_lea.vmem [#allocation2], %s535_s10 }
  0x15   : > { %s217_s16 = sshll.u32 %s207_s15, 4  ;;  %p838_p0 = pnand %p562_p13, %p804_p4  ;;  %s834_s16 = int_to_ptr.vmem [resolvable:$true] %s217_s16 }
  0x16   : > { %s204_s24 = scalar_lea.sflag [#allocation3], %s203_s9  ;;  %s615_s25 = scalar_lea.hbm %s832_s14, 256 }
  0x17   : > { %p616_p3 = scmp.ne.s32.totalorder %s832_s14, %s615_s25  ;;  %p617_p5 = pneg %p838_p0 }
  0x18   : > { %s620_s28 = scalar_lea.hbm %s953_s0, 512  ;;  %p621_p4 = scmp.lt.u32.totalorder %s832_s14, %s953_s0 }
  0x19   : > { %p618_p6 = pnand %p617_p5, %p616_p3  ;;  %p622_p10 = scmp.lt.u32.totalorder %s620_s28, %s615_s25 }
  0x1a   : > { %p624_p12 = scmp.lt.u32.totalorder %s615_s25, %s832_s14 }
  0x1b   : > { %p619_p7 = pneg %p618_p6  ;;  %p623_p13 = por %p622_p10, %p621_p4 }
  0x1d   : > { %p625_p1 = por %p624_p12, %p623_p13 }
  0x1f   : > { %p626_p2 = pnand %p625_p1, %p619_p7 }
  0x21   : > { %629 = shalt.err (!%p626_p2)
}
  0x22   : > { %s630_s9 = scalar_lea.vmem %s834_s16, 256  ;;  %s729_s12 = smov [#allocation2]  }
  0x23   : > { %p631_p3 = scmp.ne.s32.totalorder %s834_s16, %s630_s9  ;;  %s635_s13 = sshll.u32 %s729_s12, 4  ;;  %s636_s13 = int_to_ptr.vmem [resolvable:$false] %s635_s13 }
  0x24   : > { %s637_s15 = scalar_lea.vmem %s636_s13, 512  ;;  %p638_p9 = scmp.lt.s32.totalorder %s834_s16, %s636_s13 }
  0x25   : > { %p633_p6 = pnand %p631_p3, %p617_p5  ;;  %p639_p4 = scmp.lt.s32.totalorder %s637_s15, %s630_s9 }
  0x27   : > { %p634_p11 = pneg %p633_p6  ;;  %p640_p10 = por %p639_p4, %p638_p9 }
  0x29   : > { %p641_p12 = pnand %p640_p10, %p634_p11 }
  0x2b   : > { %644 = shalt.err (!%p641_p12)
}
  0x2c   : > { %557 = dma.hbm_to_vmem [thread:$0]  (!%p838_p0), %s832_s14, 256, %s834_s16, %s204_s24  }
  0x2d   : > { %p965_p1 = scmp.lt.s32.totalorder %s727_s23, 3  ;;  %p966_p2 = scmp.ge.s32.totalorder %s727_s23, 1 }
  0x2f   : > { %p223_p5 = pnand %p966_p2, %p965_p1 }
  0x30   : > { %s874_s25 = sand.u32 (!%p223_p5), 1, %s711_s19  }
  0x31   : > { %226 = sbr.rel (%p223_p5) target bundleno = 509 (0x1fd), region = 40  ;;  %s539_s27 = sshll.u32 (!%p223_p5), %s874_s25, 4 }
  0x32   : > { %s229_s29 = scalar_lea.sflag (!%p223_p5), [#allocation3], %s874_s25  ;;  %s232_s17 = scalar_lea.vmem (!%p223_p5), [#allocation2], %s539_s27 }
  0x38   : > { %698 = dma.done.wait (%p810_p8), %s229_s29, 256  }
  0x39   : > { %700 = vsyncadd (%p810_p8), %s229_s29, 4294967040  ;;  %v730_v0 = vmov 0.0   ;;  %v731_v1 = vmov 0   ;;  %v266_v2 = vld [vmem:[%s232_s17 + $0x8] sm:$0xff]  ;;  %v265_v3 = vld [vmem:[%s232_s17] sm:$0xff]  ;;  %vm272_vm0 = vcmask 64512  }
  0x3a   : > { %340 = vmatprep.mubr.f32.mxu0 %v730_v0  ;;  %614 = vset.pattern.permute.xlu0 %v731_v1  ;;  %v261_v4 = vld [vmem:[%s954_s1] sm:$0xff]  ;;  %s549_s12 = sshll.u32 %s719_s21, 8  ;;  %s258_s13 = scalar_lea.vmem [#allocation5], %s539_s27 }
  0x3b   : > { %421 = vmatprep.mubr.f32.mxu1 %v730_v0  ;;  %276 = vmatprep.subr.mxu0 %v266_v2  ;;  %v263_v5 = vld [vmem:[%s955_s2] sm:$0xff]  ;;  %s447_s15 = sshll.u32 %s258_s13, 4  ;;  %s904_s14 = scalar_lea.hbm %s958_s5, %s549_s12  ;;  %s906_s15 = int_to_ptr.vmem [resolvable:$true] %s447_s15 }
  0x3c   : > { %277 = vmatpush1.msra.mxu0 %v265_v3  ;;  %269 = vperm.xlu0 %614, %v263_v5   ;;  %v264_v6 = vld [vmem:[%s957_s4] sm:$0xff]  ;;  %s431_s21 = scalar_lea.sflag [#allocation4], %s874_s25  ;;  %s645_s27 = scalar_lea.vmem %s906_s15, 256 }
  0x3d   : > { %541 = vmatmul.mubr.msk.f32.vlgmr.msra.gmra.mrb[0].mxu0 %vm272_vm0, %v261_v4  ;;  %v262_v14 = vld [vmem:[%s956_s3] sm:$0xff]  ;;  %p646_p8 = scmp.ne.s32.totalorder %s906_s15, %s645_s27  ;;  %p967_p9 = scmp.ne.s32.totalorder %s962_s6, 0 }
  0x3e   : > { %s732_s16 = smov [#allocation5]  }
  0x3f   : > { %p647_p11 = pnand %p646_p8, %p967_p9  ;;  %s649_s24 = sshll.u32 %s732_s16, 4  ;;  %s650_s24 = int_to_ptr.vmem [resolvable:$false] %s649_s24 }
  0x40   : > { %351 = vperm.xlu0 %614, %v264_v6   ;;  %s651_s28 = scalar_lea.vmem %s650_s24, 512  ;;  %p652_p7 = scmp.lt.s32.totalorder %s906_s15, %s650_s24 }
  0x41   : > { %p648_p0 = pneg %p647_p11  ;;  %p653_p13 = scmp.lt.s32.totalorder %s651_s28, %s645_s27 }
  0x43   : > { %p654_p3 = por %p653_p13, %p652_p7 }
  0x45   : > { %p655_p6 = pnand %p654_p3, %p648_p0 }
  0xbb   : > { %v270_v7 = vpop.permute.xlu0 %269 }
  0xbf   : > { %v352_v15 = vpop.permute.xlu0 %351 }
 0x110   : > { %v342_v8 = vpop.f32.mrb[0].mxu0 }
 0x111   : > { %v343_v9 = vadd.f32 %v342_v8, %v270_v7  ;;  %v344_v10 = vpop.f32.mrb[1].mxu0 }
 0x112   : > { %v345_v11 = vadd.f32 %v344_v10, %v270_v7 }
 0x113   : > { %v347_v13 = vmax.f32 %v343_v9, 0.0 }
 0x114   : > { %v348_v12 = vmax.f32 %v345_v11, 0.0 }
 0x116   : > { %357 = vmatprep.subr.mxu1 %v348_v12 }
 0x117   : > { %358 = vmatpush1.msra.mxu1 %v347_v13 }
 0x118   : > { %542 = vmatmul.mubr.msk.f32.vlgmr.msra.gmra.mrb[0].mxu1 %vm272_vm0, %v262_v14 }
 0x1eb   : > { %v423_v16 = vpop.f32.mrb[0].mxu1 }
 0x1ec   : > { %v424_v17 = vadd.f32 %v423_v16, %v352_v15  ;;  %v425_v18 = vpop.f32.mrb[1].mxu1 }
 0x1ed   : > { %v426_v19 = vadd.f32 %v425_v18, %v352_v15 }
 0x1ee   : > { %428 = vst [vmem:[%s258_s13] sm:$0xff] %v424_v17 }
 0x1ef   : > { %429 = vst [vmem:[%s258_s13 + $0x8] sm:$0xff] %v426_v19 }
 0x1f0   : > { %658 = shalt.err (!%p655_p6)
}
 0x1f1   : > { %s659_s25 = scalar_lea.hbm %s904_s14, 256  ;;  %s663_s11 = scalar_lea.hbm %s958_s5, 512 }
 0x1f2   : > { %p660_p4 = scmp.ne.s32.totalorder %s904_s14, %s659_s25  ;;  %p664_p1 = scmp.lt.u32.totalorder %s904_s14, %s958_s5 }
 0x1f3   : > { %p665_p2 = scmp.lt.u32.totalorder %s663_s11, %s659_s25  ;;  %p667_p8 = scmp.lt.u32.totalorder %s659_s25, %s904_s14 }
 0x1f4   : > { %p661_p10 = pnand %p660_p4, %p967_p9 }
 0x1f5   : > { %p666_p5 = por %p665_p2, %p664_p1 }
 0x1f6   : > { %p662_p12 = pneg %p661_p10 }
 0x1f7   : > { %p668_p11 = por %p667_p8, %p666_p5 }
 0x1f9   : > { %p669_p0 = pnand %p668_p11, %p662_p12 }
 0x1fb   : > { %672 = shalt.err (!%p669_p0)
}
 0x1fc   : > { %552 = dma.vmem_to_hbm [thread:$0]  (%p967_p9), %s906_s15, 256, %s904_s14, %s431_s21  }
 0x1fd PF: > { %s459_s13 = sand.u32 1, %s707_s18   ;;  %p968_p7 = scmp.ne.s32.totalorder %s963_s8, 0 }
 0x1fe   : > { %p969_p13 = scmp.ge.s32.totalorder %s727_s23, 2  ;;  %s460_s29 = scalar_lea.sflag [#allocation4], %s459_s13 }
 0x200   : > { %p559_p3 = pnand %p969_p13, %p968_p7 }
 0x202   : > { %702 = dma.done.wait (!%p559_p3), %s460_s29, 256  }
 0x203   : > { %704 = vsyncadd (!%p559_p3), %s460_s29, 4294967040  ;;  %s21_s23 = sadd.s32 1, %s727_s23   ;;  %s970_s18 = smov %s711_s19 }
 0x204   : > { %p18_p6 = scmp.ge.s32.totalorder %s21_s23, 4   ;;  %s971_s19 = smov %s715_s20 }
 0x205   : > { %s972_s20 = smov %s819_s7  ;;  %s973_s21 = smov %s723_s22 }
 0x206   : > { %s974_s22 = smov %s976_s26  ;;  %20 = sbr.rel (!%p18_p6) target bundleno = 6 (0x6), region = 85 }
 0x20d   :  { %465 = vsyncpa [#allocation3], 1 }
 0x20e   :  { %467 = vsyncpa [#allocation3 + $0x1], 1 }
 0x20f   :  { %468 = vsyncpa [#allocation4], 1 }
 0x210   :  { %470 = vsyncpa [#allocation4 + $0x1], 1 }

</bundles_post_ra>
